<compile_context>
chip_gen: v5e
topology: v5e:2x2
jax: 0.10.0
libtpu: 0.0.40
codegen_flags: <defaults>
</compile_context>

<pallas_src>
import functools

import jax
import jax.numpy as jnp
from jax.experimental import pallas as pl
from jax.experimental.pallas import tpu as pltpu

ACT_FN_LIST = ['silu', 'swish', 'hswish', 'relu', 'relu6', 'mish', 'srelu']

# Activations that only use min/max/mul/add: compute in the input dtype
# (e.g. stay packed bf16 on v6e/v7x).  Transcendental ones are computed in f32.
_NATIVE_DTYPE_ACTS = frozenset({'relu', 'relu6', 'hswish'})

_LANES = 512                       # lane-dense last dim (multiple of 128)
_TARGET_BLOCK_BYTES = 1 << 21      # ~2 MiB per block -> 2x in + 2x out buffers ~ 8 MiB VMEM


def _make_act_kernel(act_name: str):
    """Build an elementwise activation kernel (act_name is static / trace-time)."""

    def kernel(x_ref, o_ref):
        x = x_ref[...]
        if act_name not in _NATIVE_DTYPE_ACTS:
            x = x.astype(jnp.float32)

        if act_name == 'silu':
            y = x * jax.nn.sigmoid(x)
        elif act_name == 'swish':
            # Mirrors the (odd) PyTorch code: hard-swish first, then h * sigmoid(h).
            h = x * jnp.clip(x + 3.0, 0.0, 6.0) * (1.0 / 6.0)
            # sigmoid(h) expressed as a single EUP tanh + cheap VPU mul/add.
            y = h * (0.5 * jnp.tanh(0.5 * h) + 0.5)
        elif act_name == 'hswish':
            y = x * jnp.clip(x + 3.0, 0.0, 6.0) * (1.0 / 6.0)
        elif act_name == 'relu':
            y = jnp.maximum(x, 0.0)
        elif act_name == 'relu6':
            y = jnp.clip(x, 0.0, 6.0)
        elif act_name == 'mish':
            # F.softplus(x) = log(1 + exp(x)); jax.nn.softplus is the stable equivalent.
            y = x * jnp.tanh(jax.nn.softplus(x))
        elif act_name == 'srelu':
            # beta = (20.0 ** 2) ** 2 = 160000.0 (constant, as in the PyTorch code)
            beta = jnp.float32(160000.0)
            safe_log = jnp.log(jnp.where(x > 0.0, beta * x + 1.0, jnp.ones_like(x)))
            y = jnp.where(x > 0.0, x - (1.0 / beta) * safe_log, jnp.zeros_like(x))
        else:
            raise ValueError(f"unknown act {act_name}")

        o_ref[...] = y.astype(o_ref.dtype)

    return kernel


@functools.partial(jax.jit, static_argnames=("act_name",))
def act_layer(x, act_name: str):
    """Apply ActLayer(act_name) to a tensor (any shape, e.g. NCHW) via a Pallas TPU kernel."""
    assert act_name in ACT_FN_LIST
    orig_shape = x.shape
    total = x.size
    lanes = _LANES

    # Lane-dense flattening: total -> (rows, 512).  Pad rows up to a multiple of the
    # block height so every grid step works on a full (block_rows, 512) tile.
    rows = -(-total // lanes)  # cdiv
    itemsize = jnp.dtype(x.dtype).itemsize
    block_rows_cap = max(8, (_TARGET_BLOCK_BYTES // (lanes * itemsize)) // 8 * 8)
    block_rows = min(block_rows_cap, ((rows + 7) // 8) * 8)
    rows_padded = ((rows + block_rows - 1) // block_rows) * block_rows
    pad = rows_padded * lanes - total  # static Python int

    x_flat = x.reshape(-1)
    if pad:
        x_flat = jnp.pad(x_flat, (0, pad))
    x2d = x_flat.reshape(rows_padded, lanes)

    grid = (rows_padded // block_rows,)

    # NOTE: default double-buffering is sufficient for this HBM-bound elementwise op;
    # a Buffered(3) input pipeline could be swept on v7x if exposed DMA shows up.
    out2d = pl.pallas_call(
        _make_act_kernel(act_name),
        out_shape=jax.ShapeDtypeStruct((rows_padded, lanes), x.dtype),
        grid=grid,
        in_specs=[pl.BlockSpec((block_rows, lanes), lambda i: (i, 0))],
        out_specs=pl.BlockSpec((block_rows, lanes), lambda i: (i, 0)),
        compiler_params=pltpu.CompilerParams(
            dimension_semantics=("parallel",)),
    )(x2d)

    out_flat = out2d.reshape(-1)
    if pad:
        out_flat = out_flat[:total]
    return out_flat.reshape(orig_shape)


def _reference(x, act_name):
    """Pure-JAX reference matching the PyTorch forward exactly."""
    if act_name == 'silu':
        return x * jax.nn.sigmoid(x)
    if act_name == 'swish':
        h = x * jnp.clip(x + 3.0, 0.0, 6.0) / 6.0
        return h * jax.nn.sigmoid(h)
    if act_name == 'hswish':
        return x * jnp.clip(x + 3.0, 0.0, 6.0) / 6.0
    if act_name == 'relu':
        return jnp.maximum(x, 0.0)
    if act_name == 'relu6':
        return jnp.clip(x, 0.0, 6.0)
    if act_name == 'mish':
        return x * jnp.tanh(jax.nn.softplus(x))
    if act_name == 'srelu':
        beta = jnp.float32(160000.0)
        safe_log = jnp.log(jnp.where(x > 0.0, beta * x + 1.0, jnp.ones_like(x)))
        return jnp.where(x > 0.0, x - (1.0 / beta) * safe_log, jnp.zeros_like(x))
    raise ValueError(act_name)


if __name__ == "__main__":
    key = jax.random.PRNGKey(0)
    # Small NCHW input, consistent with what the BiFPN neck feeds this layer.
    x = jax.random.normal(key, (2, 4, 16, 16), dtype=jnp.float32) * 3.0

    ok = True
    for name in ACT_FN_LIST:
        out = act_layer(x, name)
        out = jax.block_until_ready(out)
        ref = _reference(x, name)
        if not jnp.allclose(out, ref, atol=1e-5, rtol=1e-5):
            ok = False
            print(f"MISMATCH for {name}: max abs err = "
                  f"{float(jnp.max(jnp.abs(out - ref)))}")

    if ok:
        print("KERNEL_OK")
</pallas_src>

<mosaic_0001>
module attributes {stable_mosaic.version = 11 : i64} {
  func.func @kernel(%arg0: i32, %arg1: memref<8x512xf32, #tpu.memory_space<vmem>>, %arg2: memref<8x512xf32, #tpu.memory_space<vmem>>) attributes {dimension_semantics = [#tpu.dimension_semantics<parallel>], iteration_bounds = array<i64: 1>, scalar_prefetch = 0 : i64, scratch_operands = 0 : i64, tpu.core_type = #tpu.core_type<tc>, window_params = [{transform_indices = @transform_0, window_bounds = array<i64: 8, 512>}, {transform_indices = @transform_1, window_bounds = array<i64: 8, 512>}]} {
    %c0 = arith.constant 0 : index
    %c0_0 = arith.constant 0 : index
    %0 = vector.load %arg1[%c0, %c0_0] : memref<8x512xf32, #tpu.memory_space<vmem>>, vector<8x512xf32>
    %1 = arith.negf %0 : vector<8x512xf32>
    %2 = math.exp %1 : vector<8x512xf32>
    %cst = arith.constant 1.000000e+00 : f32
    %3 = vector.broadcast %cst : f32 to vector<8x512xf32>
    %4 = arith.addf %3, %2 : vector<8x512xf32>
    %5 = arith.divf %3, %4 : vector<8x512xf32>
    %6 = arith.mulf %0, %5 : vector<8x512xf32>
    %c0_1 = arith.constant 0 : index
    %c0_2 = arith.constant 0 : index
    %7 = vector.load %arg2[%c0_1, %c0_2] : memref<8x512xf32, #tpu.memory_space<vmem>>, vector<8x512xf32>
    tpu.vector_store %arg2[%c0_1, %c0_2], %6 {strides = array<i32>} : memref<8x512xf32, #tpu.memory_space<vmem>>, vector<8x512xf32>,
    return
  }
  func.func @transform_0(%arg0: i32) -> (i32, i32) {
    %c0_i32 = arith.constant 0 : i32
    %c0_i32_0 = arith.constant 0 : i32
    return %arg0, %c0_i32 : i32, i32
  }
  func.func @transform_1(%arg0: i32) -> (i32, i32) {
    %c0_i32 = arith.constant 0 : i32
    %c0_i32_0 = arith.constant 0 : i32
    return %arg0, %c0_i32 : i32, i32
  }
}

</mosaic_0001>

<bundles_post_ra>
// kernel: act_layer.1
= control target key start
LH: loop header
LB: loop body
LE: loop exit
PB: predicated region body
PF: predicated region fallthrough
CT: control target
= control target key end

     0   :  { %s204_s0 = inlined_call_operand.vmem [shape: f32[8,512], index: 0, kind: input, shape index: {}]   ;;  %s205_s1 = inlined_call_operand.vmem [shape: f32[8,512], index: 1, kind: output, shape index: {}]  }
   0x1   :  { %v133_v0 = vld [vmem:[%s204_s0] sm:$0xff]  ;;  %v138_v1 = vld [vmem:[%s204_s0 + $0x8] sm:$0xff]  ;;  %v143_v2 = vld [vmem:[%s204_s0 + $0x10] sm:$0xff] }
   0x2   :  { %v100_v3 = vmul.f32 -1.442695, %v133_v0  ;;  %v101_v4 = vmul.f32 -1.442695, %v138_v1  ;;  %v102_v5 = vmul.f32 -1.442695, %v143_v2 }
   0x3   :  { %v151_v6 = vld [vmem:[%s204_s0 + $0x18] sm:$0xff] }
   0x4   :  { %104 = vpow2.f32 %v100_v3  ;;  %v103_v7 = vmul.f32 -1.442695, %v151_v6 }
   0x5   :  { %106 = vpow2.f32 %v101_v4 }
   0x6   :  { %108 = vpow2.f32 %v102_v5 }
   0x7   :  { %110 = vpow2.f32 %v103_v7 }
   0xa   :  { %v105_v8 = vpop.eup %104 }
   0xb   :  { %v107_v9 = vpop.eup %106  ;;  %v24_v10 = vadd.f32 1.0, %v105_v8 }
   0xc   :  { %v109_v11 = vpop.eup %108  ;;  %v25_v12 = vadd.f32 1.0, %v107_v9 }
   0xd   :  { %v111_v13 = vpop.eup %110  ;;  %112 = vrcp.f32 %v24_v10  ;;  %v26_v14 = vadd.f32 1.0, %v109_v11  ;;  %v37_v16 = vand.u32 2147483647, %v24_v10  ;;  %v39_v17 = vand.u32 2147483648, %v24_v10 }
   0xe   :  { %114 = vrcp.f32 %v25_v12  ;;  %v27_v15 = vadd.f32 1.0, %v111_v13  ;;  %v52_v19 = vand.u32 2147483647, %v25_v12  ;;  %v54_v20 = vand.u32 2147483648, %v25_v12 }
   0xf   :  { %116 = vrcp.f32 %v26_v14  ;;  %vm33_vm0 = vweird.f32 %v24_v10  ;;  %vm48_vm1 = vweird.f32 %v25_v12  ;;  %vm154_vm3 = vcmp.eq.f32.partialorder %v37_v16, 8.507059e+37 }
  0x10   :  { %118 = vrcp.f32 %v27_v15  ;;  %v40_v26 = vor.u32 1.1754944e-38, %v39_v17  ;;  %vm158_vm5 = vcmp.eq.f32.partialorder %v52_v19, 8.507059e+37  ;;  %v55_v30 = vor.u32 1.1754944e-38, %v54_v20 }
  0x11   :  { %vm63_vm6 = vweird.f32 %v26_v14  ;;  %v67_v34 = vand.u32 2147483647, %v26_v14  ;;  %v69_v37 = vand.u32 2147483648, %v26_v14  ;;  %vm78_vm8 = vweird.f32 %v27_v15 }
  0x12   :  { %v84_v42 = vand.u32 2147483648, %v27_v15  ;;  %v82_v45 = vand.u32 2147483647, %v27_v15 }
  0x13   :  { %v113_v18 = vpop.eup %112  ;;  %vm174_vm12 = vcmp.eq.f32.partialorder %v67_v34, 8.507059e+37  ;;  %v70_v51 = vor.u32 1.1754944e-38, %v69_v37 }
  0x14   :  { %v115_v21 = vpop.eup %114  ;;  %v29_v22 = vmul.f32 %v113_v18, %v24_v10  ;;  %vm34_vm2 = vweird.f32 %v113_v18  ;;  %v85_v56 = vor.u32 1.1754944e-38, %v84_v42  ;;  %vm83_vm15 = vcmp.eq.f32.partialorder %v82_v45, 8.507059e+37 }
  0x15   :  { %v44_v23 = vmul.f32 %v115_v21, %v25_v12  ;;  %v117_v27 = vpop.eup %116  ;;  %vm49_vm4 = vweird.f32 %v115_v21  ;;  %vm163_vm7 = vmor %vm33_vm0, %vm34_vm2 }
  0x16   :  { %v30_v24 = vsub.f32 1.0, %v29_v22  ;;  %v119_v31 = vpop.eup %118  ;;  %v59_v33 = vmul.f32 %v117_v27, %v26_v14  ;;  %vm168_vm9 = vmor %vm48_vm1, %vm49_vm4  ;;  %vm64_vm10 = vweird.f32 %v117_v27 }
  0x17   :  { %v45_v28 = vsub.f32 1.0, %v44_v23  ;;  %v74_v38 = vmul.f32 %v119_v31, %v27_v15  ;;  %vm79_vm11 = vweird.f32 %v119_v31  ;;  %vm65_vm13 = vmor %vm63_vm6, %vm64_vm10 }
  0x18   :  { %v31_v32 = vmul.f32 %v113_v18, %v30_v24  ;;  %v60_v41 = vsub.f32 1.0, %v59_v33  ;;  %vm80_vm14 = vmor %vm78_vm8, %vm79_vm11 }
  0x19   :  { %v46_v36 = vmul.f32 %v115_v21, %v45_v28  ;;  %v75_v44 = vsub.f32 1.0, %v74_v38 }
  0x1a   :  { %v32_v39 = vadd.f32 %v113_v18, %v31_v32  ;;  %v61_v47 = vmul.f32 %v117_v27, %v60_v41 }
  0x1b   :  { %v47_v43 = vadd.f32 %v115_v21, %v46_v36  ;;  %v76_v52 = vmul.f32 %v119_v31, %v75_v44 }
  0x1c   :  { %v36_v46 = vsel %vm163_vm7, %v113_v18, %v32_v39  ;;  %v62_v55 = vadd.f32 %v117_v27, %v61_v47 }
  0x1d   :  { %v41_v49 = vsel %vm154_vm3, %v40_v26, %v36_v46  ;;  %v51_v50 = vsel %vm168_vm9, %v115_v21, %v47_v43  ;;  %v77_v58 = vadd.f32 %v119_v31, %v76_v52 }
  0x1e   :  { %v88_v53 = vmul.f32 %v41_v49, %v133_v0  ;;  %v56_v54 = vsel %vm158_vm5, %v55_v30, %v51_v50  ;;  %v66_v59 = vsel %vm65_vm13, %v117_v27, %v62_v55 }
  0x1f   :  { %v89_v57 = vmul.f32 %v56_v54, %v138_v1  ;;  %v71_v60 = vsel %vm174_vm12, %v70_v51, %v66_v59  ;;  %v81_v61 = vsel %vm80_vm14, %v119_v31, %v77_v58 }
  0x20   :  { %92 = vst [vmem:[%s205_s1] sm:$0xff] %v88_v53  ;;  %v90_v62 = vmul.f32 %v71_v60, %v143_v2  ;;  %v86_v63 = vsel %vm83_vm15, %v85_v56, %v81_v61 }
  0x21   :  { %93 = vst [vmem:[%s205_s1 + $0x8] sm:$0xff] %v89_v57  ;;  %v91_v0 = vmul.f32 %v86_v63, %v151_v6 }
  0x22   :  { %94 = vst [vmem:[%s205_s1 + $0x10] sm:$0xff] %v90_v62 }
  0x23   :  { %95 = vst [vmem:[%s205_s1 + $0x18] sm:$0xff] %v91_v0 }

</bundles_post_ra>
